<compile_context>
chip_gen: v7x
topology: tpu7x:2x2x1
jax: 0.10.0
libtpu: 0.0.40
codegen_flags: <defaults>
</compile_context>

<pallas_src>
import functools
import math

import jax
import jax.numpy as jnp
from jax import lax
from jax.experimental import pallas as pl
from jax.experimental.pallas import tpu as pltpu

_LANES = 128


def _round_up(x, m):
    return -(-x // m) * m


def _vmem_capacity_bytes():
    """Per-core VMEM capacity, with a conservative fallback (v7x is the smallest)."""
    try:
        return int(pltpu.get_tpu_info().vmem_capacity_bytes)
    except Exception:
        return 64 * 1024 * 1024


def _block_vmem_bytes(bb, n, c_in, c_pad):
    """Rough per-grid-step VMEM residency for batch-block size `bb`."""
    rows = bb * n
    x_blk = rows * c_in * 4 * 2            # input block, double-buffered
    o_blk = rows * c_pad * 4 * 2           # output block, double-buffered
    bias = n * n * 2 * 2                   # bf16 adjacency bias (up to 2 buffers)
    wcat = c_in * 3 * c_pad * 4 * 2        # fused weights (up to 2 buffers)
    hqk = rows * 3 * c_pad * 4             # fused feature-matmul result
    att = bb * n * n * 4 * 3               # logits + exp (+ relayout slack)
    acc = rows * c_pad * 4                 # aggregation accumulator
    return x_blk + o_blk + bias + wcat + hqk + att + acc


def _pick_batch_block(B, N, C_in, C_pad, vmem_budget):
    """Number of whole graphs per grid step.

    Targets ~1024 rows per step (amortizes the ~0.35us/step pipeline overhead and
    fills the MXU), shrinks to fit the VMEM budget, keeps (Bb*N) % 8 == 0 so
    sub-blocks satisfy the (8, 128) constraint, and keeps >= 2 grid steps when
    B >= 2 so the "parallel" axis can feed both TensorCores (v7x megacore).
    """
    step = 8 // math.gcd(N, 8)                       # makes (Bb*N) % 8 == 0
    bb = max(step, (max(step, 1024 // max(N, 1)) // step) * step)
    while bb > step and _block_vmem_bytes(bb, N, C_in, C_pad) > vmem_budget:
        bb -= step
    if B >= 2:                                       # >= 2 grid steps for megacore
        bb = min(bb, _round_up(-(-B // 2), step))
    if bb >= B:                                      # single full-dim block: always legal
        return B
    return bb


def _grid_invariant_spec(shape, nbytes):
    """BlockSpec for an operand that is the same on every grid step."""
    index_map = lambda i: (0,) * len(shape)
    if nbytes > 2 * 1024 * 1024:
        # Large constants: single-buffer so they are not resident twice in VMEM
        # (matters inside v7x's 64 MiB per-core budget).
        return pl.BlockSpec(shape, index_map, pipeline_mode=pl.Buffered(1))
    return pl.BlockSpec(shape, index_map)


def _gat_kernel(x_ref, bias_ref, wcat_ref, o_ref, *, n_nodes, bb, c_pad, bf16_mxu):
    # x_ref:    (Bb*N, C_in)       rows of Bb whole graphs (contiguous, row-major)
    # bias_ref: (N, N) bf16        additive adjacency mask: 0 (edge) / -9e15 (non-edge)
    # wcat_ref: (C_in, 3*C_pad)    fused, lane-padded [W | Q_w | K_w]
    # o_ref:    (Bb*N, C_pad)      lane-dense output block

    # One fused feature matmul with M = Bb*N rows, f32 accumulation.
    hqk = jnp.dot(x_ref[...], wcat_ref[...],
                  preferred_element_type=jnp.float32)          # (Bb*N, 3*C_pad)
    hqk = hqk.reshape(bb, n_nodes, 3 * c_pad)                  # per-graph view

    # 128-aligned column slices -> zero-cost views (no lane-crossing relayouts).
    h = hqk[:, :, 0 * c_pad:1 * c_pad]                         # (Bb, N, C_pad)
    q = hqk[:, :, 1 * c_pad:2 * c_pad]
    k = hqk[:, :, 2 * c_pad:3 * c_pad]

    # Batched attention logits: contract the feature axis of both operands
    # (equivalent to q @ k.T per graph, no explicit XLU transpose).  Kept in f32.
    att = lax.dot_general(q, k, (((2,), (2,)), ((0,), (0,))),
                          preferred_element_type=jnp.float32)  # (Bb, N, N)

    # Fused leaky_relu (slope 0.01) + additive adjacency bias (bf16 converted once
    # inside this single batched add; no hoisted f32 copy held live).
    att = jnp.maximum(att, 0.01 * att) + bias_ref[...].astype(jnp.float32)[None, :, :]

    # Softmax statistics (flash-style: denominator applied to the small accumulator).
    m = jnp.max(att, axis=-1, keepdims=True)
    e = jnp.exp(att - m)
    s = jnp.sum(e, axis=-1, keepdims=True)

    if bf16_mxu:
        acc = lax.dot_general(e.astype(jnp.bfloat16), h.astype(jnp.bfloat16),
                              (((2,), (1,)), ((0,), (0,))),
                              preferred_element_type=jnp.float32)  # (Bb, N, C_pad)
    else:
        acc = lax.dot_general(e, h, (((2,), (1,)), ((0,), (0,))),
                              preferred_element_type=jnp.float32)

    out = acc * pl.reciprocal(s, approx=False)
    o_ref[...] = out.reshape(bb * n_nodes, c_pad).astype(o_ref.dtype)


def gat_conv_pallas(X, A, weight, query_w, key_w, add_self_loop=True,
                    mxu_dtype=jnp.float32):
    """GATConv forward.

    X: (B, N, C_in) f32, A: (N, N) f32, weights: (C_in, C_out) f32.
    mxu_dtype=jnp.bfloat16 runs the feature matmul and the e@h aggregation with
    bf16 operands (f32 accumulation) for ~3x MXU throughput and half the X DMA;
    it matches the f32 reference only to ~1e-2, so the default stays f32.
    """
    B, N, C_in = X.shape
    C_out = weight.shape[1]
    C_pad = _round_up(C_out, _LANES)

    adj = A
    if add_self_loop:
        idx = jnp.arange(N)
        adj = adj.at[idx, idx].set(1.0)

    # Additive attention bias (0 where edge, -9e15 where no edge), bf16 to halve
    # its DMA / VMEM residency versus the f32 adjacency.
    bias = jnp.where(adj > 0, 0.0, -9e15).astype(jnp.bfloat16)

    # Lane-pad each weight segment to C_pad, then fuse into one operand so the
    # kernel issues a single feature matmul and a single weight DMA per step.
    def pad_w(w):
        return jnp.pad(w, ((0, 0), (0, C_pad - C_out)))
    w_cat = jnp.concatenate([pad_w(weight), pad_w(query_w), pad_w(key_w)], axis=1)

    cap = _vmem_capacity_bytes()
    Bb = _pick_batch_block(B, N, C_in, C_pad, int(0.4 * cap))
    B_pad = _round_up(B, Bb)
    n_blocks = B_pad // Bb

    X2 = X.reshape(B * N, C_in)
    if B_pad != B:
        X2 = jnp.pad(X2, ((0, (B_pad - B) * N), (0, 0)))  # padded graphs are discarded
    X2 = X2.astype(mxu_dtype)
    w_cat = w_cat.astype(mxu_dtype)

    # VMEM limit derived from actual block sizes, capped at 75% of physical
    # per-core VMEM (<= ~48 MiB on v7x), never below 32 MiB.
    est = _block_vmem_bytes(Bb, N, C_in, C_pad)
    vmem_limit = int(min(0.75 * cap, max(32 * 1024 * 1024, 2 * est)))

    flops = (2 * B_pad * N * C_in * 3 * C_pad          # fused feature matmul
             + 2 * B_pad * N * N * C_pad               # q.kT logits
             + 2 * B_pad * N * N * C_pad)              # e @ h aggregation
    bytes_accessed = (X2.size * X2.dtype.itemsize
                      + bias.size * bias.dtype.itemsize
                      + w_cat.size * w_cat.dtype.itemsize
                      + B_pad * N * C_pad * 4)
    cost = pl.CostEstimate(flops=flops, transcendentals=B_pad * N * N,
                           bytes_accessed=bytes_accessed)

    kernel = functools.partial(_gat_kernel, n_nodes=N, bb=Bb, c_pad=C_pad,
                               bf16_mxu=(mxu_dtype == jnp.bfloat16))

    out2 = pl.pallas_call(
        kernel,
        out_shape=jax.ShapeDtypeStruct((B_pad * N, C_pad), jnp.float32),
        grid_spec=pltpu.PrefetchScalarGridSpec(
            num_scalar_prefetch=0,
            grid=(n_blocks,),
            in_specs=[
                pl.BlockSpec((Bb * N, C_in), lambda i: (i, 0)),          # X rows
                _grid_invariant_spec((N, N),
                                     bias.size * bias.dtype.itemsize),   # bias
                _grid_invariant_spec((C_in, 3 * C_pad),
                                     w_cat.size * w_cat.dtype.itemsize), # weights
            ],
            out_specs=pl.BlockSpec((Bb * N, C_pad), lambda i: (i, 0)),
        ),
        compiler_params=pltpu.CompilerParams(
            dimension_semantics=("parallel",),          # megacore-shard batch blocks
            vmem_limit_bytes=vmem_limit,
        ),
        cost_estimate=cost,
    )(X2, bias, w_cat)

    return out2[:B * N, :C_out].reshape(B, N, C_out)


def xavier_uniform(key, shape, gain):
    fan_in, fan_out = shape[0], shape[1]
    limit = gain * math.sqrt(6.0 / (fan_in + fan_out))
    return jax.random.uniform(key, shape, jnp.float32, -limit, limit)


def gat_conv_ref(X, A, weight, query_w, key_w, add_self_loop=True):
    """Pure-JAX reference matching the PyTorch forward."""
    B, N, _ = X.shape
    adj = A
    if add_self_loop:
        idx = jnp.arange(N)
        adj = adj.at[idx, idx].set(1.0)
    out = X @ weight
    q = X @ query_w
    k = X @ key_w
    att = jnp.einsum("bnd,bmd->bnm", q, k)
    att = jnp.where(att > 0, att, 0.01 * att)
    att = jnp.where(adj[None, :, :] > 0, att, -9e15)
    att = jax.nn.softmax(att, axis=-1)
    return att @ out


if __name__ == "__main__":
    B, N, C_in, C_out = 2, 16, 8, 8

    key = jax.random.PRNGKey(0)
    k_x, k_a, k_w, k_al, k_q, k_k = jax.random.split(key, 6)

    # Deterministic parameter init (xavier_uniform, gain=1.414, as in reset_parameters)
    weight = xavier_uniform(k_w, (C_in, C_out), 1.414)
    alpha = xavier_uniform(k_al, (2 * C_out, 1), 1.414)  # unused in forward (as in PyTorch)
    query_w = xavier_uniform(k_q, (C_in, C_out), 1.414)
    key_w = xavier_uniform(k_k, (C_in, C_out), 1.414)

    # Inputs
    X = jax.random.normal(k_x, (B, N, C_in), jnp.float32)
    A = (jax.random.uniform(k_a, (N, N)) > 0.5).astype(jnp.float32)

    ref = gat_conv_ref(X, A, weight, query_w, key_w)

    # f32 MXU path: strict check against the f32 reference.
    out = jax.block_until_ready(gat_conv_pallas(X, A, weight, query_w, key_w))
    assert out.shape == (B, N, C_out), out.shape
    assert jnp.allclose(out, ref, atol=1e-4, rtol=1e-4), (
        float(jnp.max(jnp.abs(out - ref)))
    )

    # bf16 MXU-operand path (perf mode): looser tolerance vs the f32 reference.
    out_bf16 = jax.block_until_ready(
        gat_conv_pallas(X, A, weight, query_w, key_w, mxu_dtype=jnp.bfloat16))
    assert out_bf16.shape == (B, N, C_out), out_bf16.shape
    assert jnp.allclose(out_bf16, ref, atol=5e-2, rtol=5e-2), (
        float(jnp.max(jnp.abs(out_bf16 - ref)))
    )

    print("KERNEL_OK")
</pallas_src>

<mosaic_0001>
module attributes {stable_mosaic.version = 11 : i64} {
  func.func @_gat_kernel(%arg0: i32, %arg1: memref<16x8xf32, #tpu.memory_space<vmem>>, %arg2: memref<16x16xbf16, #tpu.memory_space<vmem>>, %arg3: memref<8x384xf32, #tpu.memory_space<vmem>>, %arg4: memref<16x128xf32, #tpu.memory_space<vmem>>) attributes {dimension_semantics = [#tpu.dimension_semantics<parallel>], iteration_bounds = array<i64: 2>, scalar_prefetch = 0 : i64, scratch_operands = 0 : i64, tpu.core_type = #tpu.core_type<tc>, window_params = [{transform_indices = @transform_0, window_bounds = array<i64: 16, 8>}, {pipeline_mode = #tpu.pipeline_mode<synchronous>, transform_indices = @transform_1, window_bounds = array<i64: 16, 16>}, {pipeline_mode = #tpu.pipeline_mode<synchronous>, transform_indices = @transform_2, window_bounds = array<i64: 8, 384>}, {transform_indices = @transform_3, window_bounds = array<i64: 16, 128>}]} {
    %c0 = arith.constant 0 : index
    %c0_0 = arith.constant 0 : index
    %0 = vector.load %arg1[%c0, %c0_0] : memref<16x8xf32, #tpu.memory_space<vmem>>, vector<16x8xf32>
    %c0_1 = arith.constant 0 : index
    %c0_2 = arith.constant 0 : index
    %1 = vector.load %arg3[%c0_1, %c0_2] : memref<8x384xf32, #tpu.memory_space<vmem>>, vector<8x384xf32>
    %cst = arith.constant dense<0.000000e+00> : vector<16x384xf32>
    %2 = tpu.matmul %0, %1, %cst {dimension_numbers = #tpu.dot_dimension_numbers<[1], [0], [0], [1], [0, 0, 1, 1], [], []>} : vector<16x8xf32>, vector<8x384xf32>, vector<16x384xf32> -> vector<16x384xf32>
    %3 = vector.shape_cast %2 : vector<16x384xf32> to vector<1x16x384xf32>
    %4 = vector.extract_strided_slice %3 {offsets = [0, 0, 0], sizes = [1, 16, 128], strides = [1, 1, 1]} : vector<1x16x384xf32> to vector<1x16x128xf32>
    %5 = vector.extract_strided_slice %3 {offsets = [0, 0, 128], sizes = [1, 16, 128], strides = [1, 1, 1]} : vector<1x16x384xf32> to vector<1x16x128xf32>
    %6 = vector.extract_strided_slice %3 {offsets = [0, 0, 256], sizes = [1, 16, 128], strides = [1, 1, 1]} : vector<1x16x384xf32> to vector<1x16x128xf32>
    %cst_3 = arith.constant dense<0.000000e+00> : vector<1x16x16xf32>
    %7 = tpu.matmul %5, %6, %cst_3 {dimension_numbers = #tpu.dot_dimension_numbers<[2], [2], [1], [1], [0, 0, 0, 1, 1, 1], [0], [0]>} : vector<1x16x128xf32>, vector<1x16x128xf32>, vector<1x16x16xf32> -> vector<1x16x16xf32>
    %cst_4 = arith.constant 0.00999999977 : f32
    %8 = vector.broadcast %cst_4 : f32 to vector<1x16x16xf32>
    %9 = arith.mulf %8, %7 : vector<1x16x16xf32>
    %10 = arith.maximumf %7, %9 : vector<1x16x16xf32>
    %c0_5 = arith.constant 0 : index
    %c0_6 = arith.constant 0 : index
    %11 = vector.load %arg2[%c0_5, %c0_6] : memref<16x16xbf16, #tpu.memory_space<vmem>>, vector<16x16xbf16>
    %12 = arith.extf %11 : vector<16x16xbf16> to vector<16x16xf32>
    %13 = vector.shape_cast %12 : vector<16x16xf32> to vector<1x16x16xf32>
    %14 = arith.addf %10, %13 : vector<1x16x16xf32>
    %cst_7 = arith.constant dense<0xFF800000> : vector<1x16xf32>
    %15 = vector.multi_reduction <maximumf>, %14, %cst_7 [2] : vector<1x16x16xf32> to vector<1x16xf32>
    %16 = vector.shape_cast %15 : vector<1x16xf32> to vector<1x16x1xf32>
    %17 = vector.broadcast %16 : vector<1x16x1xf32> to vector<1x16x16xf32>
    %18 = arith.subf %14, %17 : vector<1x16x16xf32>
    %19 = math.exp %18 : vector<1x16x16xf32>
    %cst_8 = arith.constant dense<0.000000e+00> : vector<1x16xf32>
    %20 = vector.multi_reduction <add>, %19, %cst_8 [2] : vector<1x16x16xf32> to vector<1x16xf32>
    %21 = vector.shape_cast %20 : vector<1x16xf32> to vector<1x16x1xf32>
    %cst_9 = arith.constant dense<0.000000e+00> : vector<1x16x128xf32>
    %22 = tpu.matmul %19, %4, %cst_9 {dimension_numbers = #tpu.dot_dimension_numbers<[2], [1], [1], [2], [0, 0, 0, 1, 1, 2], [0], [0]>} : vector<1x16x16xf32>, vector<1x16x128xf32>, vector<1x16x128xf32> -> vector<1x16x128xf32>
    %23 = tpu.reciprocal %21 : vector<1x16x1xf32> -> vector<1x16x1xf32>
    %24 = vector.broadcast %23 : vector<1x16x1xf32> to vector<1x16x128xf32>
    %25 = arith.mulf %22, %24 : vector<1x16x128xf32>
    %26 = vector.shape_cast %25 : vector<1x16x128xf32> to vector<16x128xf32>
    %c0_10 = arith.constant 0 : index
    %c0_11 = arith.constant 0 : index
    %27 = vector.load %arg4[%c0_10, %c0_11] : memref<16x128xf32, #tpu.memory_space<vmem>>, vector<16x128xf32>
    tpu.vector_store %arg4[%c0_10, %c0_11], %26 {strides = array<i32>} : memref<16x128xf32, #tpu.memory_space<vmem>>, vector<16x128xf32>,
    return
  }
  func.func @transform_0(%arg0: i32) -> (i32, i32) {
    %c0_i32 = arith.constant 0 : i32
    %c0_i32_0 = arith.constant 0 : i32
    return %arg0, %c0_i32 : i32, i32
  }
  func.func @transform_1(%arg0: i32) -> (i32, i32) {
    %c0_i32 = arith.constant 0 : i32
    %c0_i32_0 = arith.constant 0 : i32
    %c0_i32_1 = arith.constant 0 : i32
    return %c0_i32, %c0_i32_0 : i32, i32
  }
  func.func @transform_2(%arg0: i32) -> (i32, i32) {
    %c0_i32 = arith.constant 0 : i32
    %c0_i32_0 = arith.constant 0 : i32
    %c0_i32_1 = arith.constant 0 : i32
    return %c0_i32, %c0_i32_0 : i32, i32
  }
  func.func @transform_3(%arg0: i32) -> (i32, i32) {
    %c0_i32 = arith.constant 0 : i32
    %c0_i32_0 = arith.constant 0 : i32
    return %arg0, %c0_i32 : i32, i32
  }
}

</mosaic_0001>

<bundles_post_ra>
// kernel: tpu_custom_call.1
= control target key start
LH: loop header
LB: loop body
LE: loop exit
PB: predicated region body
PF: predicated region fallthrough
CT: control target
= control target key end

     0   :  { %8 = vsyncpa [#allocation3], 0  ;;  %s922_s0 = inlined_call_operand.vmem [shape: f32[32,8], index: 0, kind: input, shape index: {}]   ;;  %s923_s1 = inlined_call_operand.vmem [shape: bf16[16,16], index: 1, kind: input, shape index: {}]   ;;  %s924_s2 = inlined_call_operand.vmem [shape: f32[8,384], index: 2, kind: input, shape index: {}]   ;;  %s925_s3 = inlined_call_operand.hbm [shape: f32[32,128], index: 3, kind: output, shape index: {}]  }
   0x1   :  { %10 = vsyncpa [#allocation3 + $0x1], 0  ;;  %s802_s12 = smov 0   ;;  %s804_s13 = smov 0  }
   0x2   :  { %s806_s14 = smov 0   ;;  %s808_s15 = smov 0  }
   0x3 LB: > { %s823_s16 = sadd.s32 4294967295, %s776_s15   ;;  %s603_s17 = sadd.s32 4294967294, %s776_s15   ;;  %s776_s15 = sphi %s808_s15, %s931_s15   ;;  %s772_s14 = sphi %s806_s14, %s930_s14   ;;  %s768_s13 = sphi %s804_s13, %s929_s13   ;;  %s764_s12 = sphi %s802_s12, %s928_s12  }
   0x4   : > { %s827_s18 = sadd.s32 1, %s776_s15   ;;  %s91_s19 = sadd.s32 1, %s772_s14 }
   0x5   : > { %s88_s20 = ssub.s32 %s776_s15, %s827_s18  ;;  %p101_p0 = scmp.ne.s32.totalorder %s772_s14, %s768_s13 }
   0x6   : > { %p89_p1 = scmp.eq.s32.totalorder %s88_s20, 0  ;;  %p102_p2 = scmp.eq.s32.totalorder %s823_s16, 1 }
   0x7   : > { %p107_p3 = scmp.ne.s32.totalorder %s768_s13, %s764_s12  ;;  %p108_p4 = scmp.eq.s32.totalorder %s603_s17, 1 }
   0x8   : > { %s838_s21 = scalar_select %p89_p1, %s772_s14, %s91_s19  }
   0x9   : > { %p840_p5 = por %p102_p2, %p101_p0  ;;  %p844_p6 = por %p108_p4, %p107_p3 }
   0xa   : > { %p606_p7 = scmp.ge.s32.totalorder %s776_s15, 1  ;;  %p141_p8 = scmp.lt.s32.totalorder %s776_s15, 3 }
   0xc   : > { %p142_p9 = pnand %p606_p7, %p141_p8 }
   0xd   : > { %v176_v0 = vld [vmem:[%s924_s2 + $0x10] sm:$0xff] (!%p142_p9)  ;;  %s608_s26 = sshll.u32 (!%p142_p9), %s823_s16, 1  ;;  %v175_v1 = vld [vmem:[%s924_s2 + $0x8] sm:$0xff] (!%p142_p9)  ;;  %v174_v2 = vld [vmem:[%s924_s2] sm:$0xff] (!%p142_p9)  ;;  %v778_v3 = vmov (!%p142_p9), 0.0   ;;  %vm177_vm0 = vcmask (!%p142_p9), 64512  }
   0xe   : > { %145 = sbr.rel (%p142_p9) target bundleno = 860 (0x35c), region = 32  ;;  %637 = vmatprep.subr.mxu1 (!%p142_p9), %v176_v0  ;;  %p166_p10 = scmp.lt.s32.totalorder (!%p142_p9), %s608_s26, 3  ;;  %184 = vmatprep.subr.mxu0 (!%p142_p9), %v175_v1  ;;  %v623_v14 = vld [vmem:[%s923_s1] sm:$0xff] (!%p142_p9)   ;;  %vm421_vm1 = vcmask (!%p142_p9), 130048  }
   0xf   : > { %638 = vmatpush3.msra.mxu1 (!%p142_p9), %v176_v0  ;;  %185 = vmatpush1.msra.mxu0 (!%p142_p9), %v174_v2  ;;  %v624_v19 = vunpack.c.l.bf16 (!%p142_p9), %v623_v14  ;;  %v625_v22 = vunpack.c.h.bf16 (!%p142_p9), %v623_v14  ;;  %s162_s10 = sand.u32 (!%p142_p9), 1, %s768_s13   ;;  %s621_s20 = sshll.u32 (!%p142_p9), %s823_s16, 8 }
  0x10   : > { %248 = vmatprep.mubr.f32.mxu0 (!%p142_p9), %v778_v3  ;;  %s607_s11 = sshll.u32 (!%p142_p9), %s162_s10, 4  ;;  %s881_s27 = scalar_lea.sflag (!%p142_p9), [#allocation3], %s162_s10 }
  0x11   : > { %s164_s17 = scalar_lea.vmem (!%p142_p9), [#allocation2], %s607_s11  ;;  %s779_s28 = smov (!%p142_p9), [#allocation2]  }
  0x12   : > { %s541_s19 = sshll.u32 (!%p142_p9), %s164_s17, 4  ;;  %s718_s29 = sshll.u32 (!%p142_p9), %s779_s28, 4  ;;  %s874_s19 = int_to_ptr.vmem [resolvable:$true] %s541_s19  ;;  %s719_s29 = int_to_ptr.vmem [resolvable:$false] %s718_s29 }
  0x13   : > { %s714_s16 = scalar_lea.vmem (!%p142_p9), %s874_s19, 256  ;;  %s720_s30 = scalar_lea.vmem (!%p142_p9), %s719_s29, 512 }
  0x14   : > { %p715_p11 = scmp.ne.s32.totalorder (!%p142_p9), %s874_s19, %s714_s16  ;;  %p721_p0 = scmp.lt.s32.totalorder (!%p142_p9), %s874_s19, %s719_s29 }
  0x15   : > { %s933_s26 = smov (!%p166_p10, %s608_s26), 3  ;;  %p722_p1 = scmp.lt.s32.totalorder %s720_s30, %s714_s16 }
  0x16   : > { %s609_s4 = sshll.u32 %s933_s26, 3  ;;  %s879_s26 = scalar_lea.hbm %s925_s3, %s621_s20 }
  0x17   : > { %s169_s7 = scalar_lea.vmem %s922_s0, %s609_s4  ;;  %p716_p12 = pnand %p715_p11, %p840_p5 }
  0x18   : > { %v172_v4 = vld [vmem:[%s169_s7] sm:$0xff]  ;;  %v173_v5 = vld [vmem:[%s169_s7 + $0x8] sm:$0xff]  ;;  %p723_p2 = por %p722_p1, %p721_p0 }
  0x19   : > { %639 = vmatprep.mubr.msk.f32.mxu1 %vm177_vm0, %v172_v4  ;;  %610 = vmatmul.mubr.msk.f32.vlgmr.msra.gmra.mrb[0].mxu0 %vm177_vm0, %v172_v4  ;;  %p717_p13 = pneg %p716_p12 }
  0x1a   : > { %640 = vmatmul.mubr.msk.f32.vlgmr.msra.gmra.mrb[0].mxu1 %vm177_vm0, %v173_v5  ;;  %254 = vmatprep.mubr.f32.mxu0 %v778_v3 }
  0x1b   : > { %p724_p3 = pnand %p723_p2, %p717_p13 }
  0x1d   : > { %611 = vmatmul.mubr.msk.f32.gmra.mrb[2].mxu0 %vm177_vm0, %v173_v5 }
  0xec   : > { %v250_v6 = vpop.f32.mrb[0].mxu0 }
  0xed   : > { %v641_v7 = vpop.f32.mrb[0].mxu1  ;;  %v252_v8 = vpop.f32.mrb[1].mxu0 }
  0xee   : > { %v327_v9 = vpop.f32.mrb[1].mxu1  ;;  %646 = vmatprep.mubr.f32.mxu0 %v252_v8 }
  0xef   : > { %v656_v10 = vpack.c.bf16 %v641_v7, %v327_v9 }
  0xf0   : > { %v256_v11 = vpop.f32.mrb[2].mxu0 }
  0xf1   : > { %657 = vmatprep.subr.bf16.mxu0 %v656_v10  ;;  %v660_v12 = vpack.c.bf16 %v256_v11, %v250_v6  ;;  %v258_v13 = vpop.f32.mrb[3].mxu0 }
  0xf2   : > { %659 = vmatpush3.bf16.xpose.msra.mxu0 %v656_v10 }
  0xf3   : > { %661 = vmatprep.subr.bf16.mxu1 %v660_v12 }
  0xf4   : > { %663 = vmatpush3.bf16.msra.mxu1 %v660_v12 }
  0xf9   : > { %647 = vmatmul.mubr.f32.vlgmr.msra.gmra.mrb[4].mxu0 %v258_v13 }
 0x1cc   : > { %v648_v15 = vpop.f32.mrb[4].mxu0 }
 0x1cd   : > { %v412_v16 = vmul.f32 0.01, %v648_v15  ;;  %v402_v17 = vpop.f32.mrb[5].mxu0 }
 0x1ce   : > { %v411_v18 = vmul.f32 0.01, %v402_v17 }
 0x1cf   : > { %v414_v20 = vmax.f32 %v648_v15, %v412_v16 }
 0x1d0   : > { %v413_v21 = vmax.f32 %v402_v17, %v411_v18 }
 0x1d1   : > { %v420_v25 = vadd.f32 %v625_v22, %v414_v20 }
 0x1d2   : > { %v419_v23 = vadd.f32 %v624_v19, %v413_v21 }
 0x1d3   : > { %v425_v26 = vsel %vm421_vm1, %v420_v25, -inf }
 0x1d4   : > { %v422_v24 = vsel %vm421_vm1, %v419_v23, -inf }
 0x1d5   : > { %423 = vmax.xlane.f32.xlu0 %v422_v24 }
 0x1d9   : > { %426 = vmax.xlane.f32.xlu0 %v425_v26 }
 0x262   : > { %v424_v27 = vpop.xlane.xlu0 %423 }
 0x263   : > { %v428_v28 = vsub.f32 %v419_v23, %v424_v27 }
 0x265   : > { %v430_v29 = vmul.f32 1.442695, %v428_v28 }
 0x266   : > { %v427_v30 = vpop.xlane.xlu0 %426 }
 0x267   : > { %706 = vpow2.f32 %v430_v29  ;;  %v429_v31 = vsub.f32 %v420_v25, %v427_v30 }
 0x269   : > { %v432_v32 = vmul.f32 1.442695, %v429_v31 }
 0x26b   : > { %708 = vpow2.f32 %v432_v32 }
 0x271   : > { %v707_v33 = vpop.eup %706 }
 0x272   : > { %653 = vmatprep.mubr.msk.f32.mxu1 %vm421_vm1, %v707_v33  ;;  %v434_v34 = vsel %vm421_vm1, %v707_v33, 0.0 }
 0x273   : > { %435 = vadd.xlane.f32.xlu1 %v434_v34 }
 0x275   : > { %v709_v35 = vpop.eup %708 }
 0x276   : > { %654 = vmatmul.mubr.msk.f32.vlgmr.msra.gmra.mrb[2].mxu1 %vm421_vm1, %v709_v35  ;;  %v437_v36 = vsel %vm421_vm1, %v709_v35, 0.0 }
 0x277   : > { %438 = vadd.xlane.f32.xlu1 %v437_v36 }
 0x300   : > { %v436_v37 = vpop.xlane.xlu1 %435 }
 0x304   : > { %v439_v38 = vpop.xlane.xlu1 %438 }
 0x305   : > { %710 = vrcp.f32 %v439_v38 }
 0x306   : > { %712 = vrcp.f32 %v436_v37 }
 0x30f   : > { %v711_v39 = vpop.eup %710 }
 0x310   : > { %v713_v41 = vpop.eup %712 }
 0x349   : > { %v655_v40 = vpop.f32.mrb[2].mxu1 }
 0x34a   : > { %v524_v42 = vmul.f32 %v711_v39, %v655_v40  ;;  %v512_v43 = vpop.f32.mrb[3].mxu1 }
 0x34b   : > { %v523_v44 = vmul.f32 %v713_v41, %v512_v43 }
 0x34c   : > { %526 = vst [vmem:[%s164_s17 + $0x8] sm:$0xff] %v524_v42 }
 0x34d   : > { %525 = vst [vmem:[%s164_s17] sm:$0xff] %v523_v44 }
 0x34e   : > { %727 = shalt.err (!%p724_p3)
}
 0x34f   : > { %s728_s4 = scalar_lea.hbm %s879_s26, 256  ;;  %s732_s7 = scalar_lea.hbm %s925_s3, 512 }
 0x350   : > { %p729_p4 = scmp.ne.s32.totalorder %s879_s26, %s728_s4  ;;  %p733_p9 = scmp.lt.u32.totalorder %s879_s26, %s925_s3 }
 0x351   : > { %p734_p10 = scmp.lt.u32.totalorder %s732_s7, %s728_s4  ;;  %p736_p12 = scmp.lt.u32.totalorder %s728_s4, %s879_s26 }
 0x352   : > { %p730_p7 = pnand %p729_p4, %p840_p5 }
 0x353   : > { %p735_p11 = por %p734_p10, %p733_p9 }
 0x354   : > { %p731_p8 = pneg %p730_p7 }
 0x355   : > { %p737_p13 = por %p736_p12, %p735_p11 }
 0x357   : > { %p738_p0 = pnand %p737_p13, %p731_p8 }
 0x359   : > { %741 = shalt.err (!%p738_p0)
}
 0x35a   : > { %s780_s10 = smov 128   ;;  %s781_s11 = smov 8  }
 0x35b   : > { %664 = dma.vmem_to_hbm [thread:$0]  (%p840_p5), %s874_s19, 256, %s879_s26, %s881_s27, %s780_s10, %s780_s10, %s781_s11  }
 0x35c PF: > { %p670_p1 = scmp.ge.s32.totalorder %s776_s15, 2  ;;  %s556_s17 = sand.u32 1, %s764_s12  }
 0x35d   : > { %s557_s20 = scalar_lea.sflag [#allocation3], %s556_s17 }
 0x35e   : > { %p667_p2 = pnand %p670_p1, %p844_p6 }
 0x360   : > { %759 = dma.done.wait (!%p667_p2), %s557_s20, 256  }
 0x361   : > { %761 = vsyncadd (!%p667_p2), %s557_s20, 4294967040  ;;  %p13_p3 = scmp.ge.s32.totalorder %s827_s18, 4   ;;  %s928_s12 = smov %s768_s13 }
 0x362   : > { %s929_s13 = smov %s772_s14  ;;  %s930_s14 = smov %s838_s21 }
 0x363   : > { %s931_s15 = smov %s827_s18  ;;  %15 = sbr.rel (!%p13_p3) target bundleno = 3 (0x3), region = 67 }
 0x36a   :  { %562 = vsyncpa [#allocation3], 1 }
 0x36b   :  { %564 = vsyncpa [#allocation3 + $0x1], 1 }

</bundles_post_ra>
